<compile_context>
chip_gen: v7x
topology: tpu7x:2x2x1
jax: 0.10.0
libtpu: 0.0.40
codegen_flags: <defaults>
</compile_context>

<pallas_src>
import functools

import jax
import jax.numpy as jnp
from jax import lax
from jax.experimental import pallas as pl
from jax.experimental.pallas import tpu as pltpu

THRESH = 0.5       # base
EPSILON = 0.1      # miner epsilon
SCALE_POS = 2.0    # alpha
SCALE_NEG = 50.0   # beta


def _round_up(x, m):
    return ((x + m - 1) // m) * m


def _ms_loss_tile_kernel(n_actual, tm, n_pad,
                         emb_tile_ref, embT_ref, labc_ref, labr_ref,
                         part_ref):
    i = pl.program_id(0)
    row_base = i * tm

    # Cosine-similarity tile on the MXU.  Embeddings were pre-normalized (f32)
    # and cast to bf16 in the wrapper; the reference matrix is pre-transposed
    # to (D_pad, N_pad), so this is a native (M,K)x(K,N) bf16 matmul, f32 acc.
    s = jnp.dot(emb_tile_ref[...], embT_ref[...],
                preferred_element_type=jnp.float32)            # (TM, N_pad) f32

    # --- pair masks ------------------------------------------------------------
    labc = labc_ref[...]                                       # (TM, 1) int32
    labr = labr_ref[...]                                       # (1, N_pad) int32
    same = labc == labr                                        # (TM, N_pad)

    col_ids = lax.broadcasted_iota(jnp.int32, (tm, n_pad), 1)           # lane iota
    row_ids = row_base + lax.broadcasted_iota(jnp.int32, (tm, 1), 0)    # (TM, 1)
    diag = col_ids == row_ids                                  # self-pairs

    pos_mask = same & (~diag)                                  # positive pairs
    neg_mask = ~same                                           # negative pairs
    if n_pad != n_actual:                                      # static: only if padded
        col_valid = lax.broadcasted_iota(jnp.int32, (1, n_pad), 1) < n_actual
        row_valid = row_ids < n_actual
        valid = col_valid & row_valid                          # broadcast (TM, N_pad)
        pos_mask = pos_mask & valid
        neg_mask = neg_mask & valid

    # --- MultiSimilarityMiner: epsilon folded into the (TM,1) thresholds -------
    neg_inf = jnp.float32(-jnp.inf)
    pos_inf = jnp.float32(jnp.inf)
    neg_max = jnp.max(jnp.where(neg_mask, s, neg_inf), axis=1, keepdims=True)
    pos_min = jnp.min(jnp.where(pos_mask, s, pos_inf), axis=1, keepdims=True)
    thr_p = neg_max + EPSILON                                  # (TM, 1)
    thr_n = pos_min - EPSILON                                  # (TM, 1)
    hard_pos = pos_mask & (s < thr_p)
    hard_neg = neg_mask & (s > thr_n)

    # --- MS loss: exps on the EUP, reciprocal via approx EUP vrcp ---------------
    sm = s - THRESH
    pos_exp = pl.reciprocal(jnp.exp(SCALE_POS * sm), approx=True)  # exp(-2*(s-0.5))
    neg_exp = jnp.exp(SCALE_NEG * sm)                              # exp(50*(s-0.5))

    pos_sum = jnp.sum(jnp.where(hard_pos, pos_exp, 0.0), axis=1, keepdims=True)
    neg_sum = jnp.sum(jnp.where(hard_neg, neg_exp, 0.0), axis=1, keepdims=True)
    hp_cnt = jnp.sum(hard_pos.astype(jnp.float32), axis=1, keepdims=True)
    hn_cnt = jnp.sum(hard_neg.astype(jnp.float32), axis=1, keepdims=True)

    pos_loss = jnp.where(hp_cnt > 0.0,
                         (1.0 / SCALE_POS) * jnp.log(1.0 + pos_sum), 0.0)
    neg_loss = jnp.where(hn_cnt > 0.0,
                         (1.0 / SCALE_NEG) * jnp.log(1.0 + neg_sum), 0.0)
    losses = pos_loss + neg_loss                               # (TM, 1)

    # --- per-tile partials: [loss_sum, nonzero_count, n_hard_pos, n_hard_neg] ---
    loss_sum = jnp.sum(losses, axis=0, keepdims=True)                       # (1,1)
    nz_sum = jnp.sum((losses > 0.0).astype(jnp.float32), axis=0, keepdims=True)
    hp_sum = jnp.sum(hp_cnt, axis=0, keepdims=True)
    hn_sum = jnp.sum(hn_cnt, axis=0, keepdims=True)

    lane = lax.broadcasted_iota(jnp.int32, (1, 128), 1)
    row = (jnp.where(lane == 0, loss_sum, 0.0)
           + jnp.where(lane == 1, nz_sum, 0.0)
           + jnp.where(lane == 2, hp_sum, 0.0)
           + jnp.where(lane == 3, hn_sum, 0.0))                # (1, 128)
    part_ref[...] = jnp.broadcast_to(row, (8, 128))            # lane-dense store


def multi_similarity_loss(embeddings, labels, *, tm=None):
    """embeddings: (N, D) float (any dtype); labels: (N,) int. Returns scalar f32."""
    n, d = embeddings.shape

    # Generation query: VMEM capacity drives both the tile heuristic and the cap.
    try:
        vmem_cap = int(pltpu.get_tpu_info().vmem_capacity_bytes)
    except Exception:
        vmem_cap = 64 << 20                      # conservative (v7x-sized) fallback
    small_vmem = vmem_cap <= (80 << 20)          # v7x-class: 64 MiB/TC, 2 TCs

    n8 = max(8, _round_up(n, 8))
    if tm is None:
        if small_vmem:
            # v7x: smaller tiles; aim for >=2 grid steps so both TCs get work.
            if n <= 1024:
                tm = max(16, _round_up(pl.cdiv(n, 2), 16))
            else:
                tm = 128
        else:
            # v5e / v6e: 128 MiB VMEM -> bigger resident tiles.
            if n <= 512:
                tm = n8
            elif n <= 2048:
                tm = 256
            else:
                tm = 128
    tm = max(8, _round_up(min(tm, n8), 8))
    n_pad = _round_up(n, tm)
    num_tiles = n_pad // tm
    d_pad = _round_up(d, 128)                    # MXU-aligned contraction dim

    # --- one-time XLA-side prep: f32 L2-normalize, pad, bf16 cast, transpose ----
    emb = embeddings.astype(jnp.float32)
    norm = jnp.sqrt(jnp.sum(emb * emb, axis=1, keepdims=True))
    emb = emb / jnp.maximum(norm, 1e-12)         # F.normalize(eps=1e-12)
    if d_pad != d:
        emb = jnp.pad(emb, ((0, 0), (0, d_pad - d)))
    if n_pad != n:
        emb = jnp.pad(emb, ((0, n_pad - n), (0, 0)))
    emb_bf = emb.astype(jnp.bfloat16)            # (N_pad, D_pad) anchors
    emb_t = emb_bf.T                             # (D_pad, N_pad) reference, MXU-ready

    lab = labels.astype(jnp.int32)
    if n_pad != n:
        # Padded rows/cols are masked out in-kernel; label value is irrelevant.
        lab = jnp.pad(lab, (0, n_pad - n), constant_values=-1)
    lab_col = lab.reshape(n_pad, 1)
    lab_row = lab.reshape(1, n_pad)

    # VMEM budget: double-buffered bf16 operands + ~14 live (TM, N_pad) f32 slabs.
    est = (2 * d_pad * n_pad * 2) + (2 * tm * d_pad * 2) \
        + (14 * tm * n_pad * 4) + (4 * (tm + n_pad) * 4) + (2 << 20)
    ceiling = (vmem_cap * 3) // 4                # ~48 MiB v7x, ~96 MiB v5e/v6e
    vmem_limit = int(min(max(est, 32 << 20), ceiling))

    kernel = functools.partial(_ms_loss_tile_kernel, n, tm, n_pad)

    parts = pl.pallas_call(
        kernel,
        out_shape=jax.ShapeDtypeStruct((num_tiles * 8, 128), jnp.float32),
        grid=(num_tiles,),
        in_specs=[
            pl.BlockSpec((tm, d_pad), lambda i: (i, 0)),     # anchor row tile (bf16)
            pl.BlockSpec((d_pad, n_pad), lambda i: (0, 0)),  # resident ref^T (bf16)
            pl.BlockSpec((tm, 1), lambda i: (i, 0)),         # tile labels (col)
            pl.BlockSpec((1, n_pad), lambda i: (0, 0)),      # all labels (row)
        ],
        out_specs=pl.BlockSpec((8, 128), lambda i: (i, 0)),
        compiler_params=pltpu.CompilerParams(
            dimension_semantics=("parallel",),
            vmem_limit_bytes=vmem_limit,
        ),
    )(emb_bf, emb_t, lab_col, lab_row)

    # Final scalar reduction in the wrapper (keeps the grid axis "parallel").
    per_tile = parts.reshape(num_tiles, 8, 128)[:, 0, :]       # (num_tiles, 128)
    totals = jnp.sum(per_tile, axis=0)                         # (128,)
    total_loss, count, n_hp, n_hn = totals[0], totals[1], totals[2], totals[3]

    # AvgNonZeroReducer
    mean_loss = jnp.where(count > 0.0, total_loss / jnp.maximum(count, 1.0),
                          jnp.float32(0.0))
    # GenericPairLoss edge case: <=1 hard-pos pair AND <=1 hard-neg pair -> 0
    mean_loss = jnp.where((n_hp <= 1.0) & (n_hn <= 1.0),
                          jnp.float32(0.0), mean_loss)
    return mean_loss


if __name__ == "__main__":
    key = jax.random.PRNGKey(0)
    k_emb, k_lab = jax.random.split(key)
    # NOTE: at this tiny size plain XLA would match the kernel; sizes kept small
    # per the test harness. The kernel itself scales to large N via row tiling.
    N, D = 8, 32
    embeddings = jax.random.normal(k_emb, (N, D), dtype=jnp.float32)
    labels = jax.random.randint(k_lab, (N,), 0, 3, dtype=jnp.int32)

    loss = multi_similarity_loss(embeddings, labels)
    jax.block_until_ready(loss)
    print("KERNEL_OK")
</pallas_src>

<mosaic_0001>
module attributes {stable_mosaic.version = 11 : i64} {
  func.func @_ms_loss_tile_kernel(%arg0: i32, %arg1: memref<8x128xbf16, #tpu.memory_space<vmem>>, %arg2: memref<128x8xbf16, #tpu.memory_space<vmem>>, %arg3: memref<8x1xi32, #tpu.memory_space<vmem>>, %arg4: memref<1x8xi32, #tpu.memory_space<vmem>>, %arg5: memref<8x128xf32, #tpu.memory_space<vmem>>) attributes {dimension_semantics = [#tpu.dimension_semantics<parallel>], iteration_bounds = array<i64: 1>, scalar_prefetch = 0 : i64, scratch_operands = 0 : i64, tpu.core_type = #tpu.core_type<tc>, window_params = [{transform_indices = @transform_0, window_bounds = array<i64: 8, 128>}, {pipeline_mode = #tpu.pipeline_mode<synchronous>, transform_indices = @transform_1, window_bounds = array<i64: 128, 8>}, {transform_indices = @transform_2, window_bounds = array<i64: 8, 1>}, {pipeline_mode = #tpu.pipeline_mode<synchronous>, transform_indices = @transform_3, window_bounds = array<i64: 1, 8>}, {transform_indices = @transform_4, window_bounds = array<i64: 8, 128>}]} {
    %c8_i32 = arith.constant 8 : i32
    %0 = arith.muli %arg0, %c8_i32 : i32
    %c0 = arith.constant 0 : index
    %c0_0 = arith.constant 0 : index
    %1 = vector.load %arg1[%c0, %c0_0] : memref<8x128xbf16, #tpu.memory_space<vmem>>, vector<8x128xbf16>
    %c0_1 = arith.constant 0 : index
    %c0_2 = arith.constant 0 : index
    %2 = vector.load %arg2[%c0_1, %c0_2] : memref<128x8xbf16, #tpu.memory_space<vmem>>, vector<128x8xbf16>
    %cst = arith.constant dense<0.000000e+00> : vector<8x8xf32>
    %3 = tpu.matmul %1, %2, %cst {dimension_numbers = #tpu.dot_dimension_numbers<[1], [0], [0], [1], [0, 0, 1, 1], [], []>} : vector<8x128xbf16>, vector<128x8xbf16>, vector<8x8xf32> -> vector<8x8xf32>
    %c0_3 = arith.constant 0 : index
    %c0_4 = arith.constant 0 : index
    %4 = vector.load %arg3[%c0_3, %c0_4] : memref<8x1xi32, #tpu.memory_space<vmem>>, vector<8x1xi32>
    %c0_5 = arith.constant 0 : index
    %c0_6 = arith.constant 0 : index
    %5 = vector.load %arg4[%c0_5, %c0_6] : memref<1x8xi32, #tpu.memory_space<vmem>>, vector<1x8xi32>
    %6 = vector.broadcast %4 : vector<8x1xi32> to vector<8x8xi32>
    %7 = vector.broadcast %5 : vector<1x8xi32> to vector<8x8xi32>
    %8 = arith.cmpi eq, %6, %7 : vector<8x8xi32>
    %9 = tpu.iota {dimensions = array<i32: 1>} : vector<8x8xi32>
    %10 = tpu.iota {dimensions = array<i32: 0>} : vector<8x1xi32>
    %11 = vector.broadcast %0 : i32 to vector<8x1xi32>
    %12 = arith.addi %11, %10 : vector<8x1xi32>
    %13 = vector.broadcast %12 : vector<8x1xi32> to vector<8x8xi32>
    %14 = arith.cmpi eq, %9, %13 : vector<8x8xi32>
    %cst_7 = arith.constant dense<true> : vector<8x8xi1>
    %15 = arith.xori %14, %cst_7 : vector<8x8xi1>
    %16 = arith.andi %8, %15 : vector<8x8xi1>
    %cst_8 = arith.constant dense<true> : vector<8x8xi1>
    %17 = arith.xori %8, %cst_8 : vector<8x8xi1>
    %cst_9 = arith.constant 0xFF800000 : f32
    %18 = vector.broadcast %cst_9 : f32 to vector<8x8xf32>
    %19 = arith.select %17, %3, %18 : vector<8x8xi1>, vector<8x8xf32>
    %cst_10 = arith.constant dense<0xFF800000> : vector<8xf32>
    %20 = vector.multi_reduction <maximumf>, %19, %cst_10 [1] : vector<8x8xf32> to vector<8xf32>
    %21 = vector.shape_cast %20 : vector<8xf32> to vector<8x1xf32>
    %cst_11 = arith.constant 0x7F800000 : f32
    %22 = vector.broadcast %cst_11 : f32 to vector<8x8xf32>
    %23 = arith.select %16, %3, %22 : vector<8x8xi1>, vector<8x8xf32>
    %cst_12 = arith.constant dense<0x7F800000> : vector<8xf32>
    %24 = vector.multi_reduction <minimumf>, %23, %cst_12 [1] : vector<8x8xf32> to vector<8xf32>
    %25 = vector.shape_cast %24 : vector<8xf32> to vector<8x1xf32>
    %cst_13 = arith.constant 1.000000e-01 : f32
    %26 = vector.broadcast %cst_13 : f32 to vector<8x1xf32>
    %27 = arith.addf %21, %26 : vector<8x1xf32>
    %cst_14 = arith.constant 1.000000e-01 : f32
    %28 = vector.broadcast %cst_14 : f32 to vector<8x1xf32>
    %29 = arith.subf %25, %28 : vector<8x1xf32>
    %30 = vector.broadcast %27 : vector<8x1xf32> to vector<8x8xf32>
    %31 = arith.cmpf olt, %3, %30 : vector<8x8xf32>
    %32 = arith.andi %16, %31 : vector<8x8xi1>
    %33 = vector.broadcast %29 : vector<8x1xf32> to vector<8x8xf32>
    %34 = arith.cmpf ogt, %3, %33 : vector<8x8xf32>
    %35 = arith.andi %17, %34 : vector<8x8xi1>
    %cst_15 = arith.constant 5.000000e-01 : f32
    %36 = vector.broadcast %cst_15 : f32 to vector<8x8xf32>
    %37 = arith.subf %3, %36 : vector<8x8xf32>
    %cst_16 = arith.constant 2.000000e+00 : f32
    %38 = vector.broadcast %cst_16 : f32 to vector<8x8xf32>
    %39 = arith.mulf %38, %37 : vector<8x8xf32>
    %40 = math.exp %39 : vector<8x8xf32>
    %41 = tpu.reciprocal %40 {approx = true} : vector<8x8xf32> -> vector<8x8xf32>
    %cst_17 = arith.constant 5.000000e+01 : f32
    %42 = vector.broadcast %cst_17 : f32 to vector<8x8xf32>
    %43 = arith.mulf %42, %37 : vector<8x8xf32>
    %44 = math.exp %43 : vector<8x8xf32>
    %cst_18 = arith.constant 0.000000e+00 : f32
    %45 = vector.broadcast %cst_18 : f32 to vector<8x8xf32>
    %46 = arith.select %32, %41, %45 : vector<8x8xi1>, vector<8x8xf32>
    %cst_19 = arith.constant dense<0.000000e+00> : vector<8xf32>
    %47 = vector.multi_reduction <add>, %46, %cst_19 [1] : vector<8x8xf32> to vector<8xf32>
    %48 = vector.shape_cast %47 : vector<8xf32> to vector<8x1xf32>
    %cst_20 = arith.constant 0.000000e+00 : f32
    %49 = vector.broadcast %cst_20 : f32 to vector<8x8xf32>
    %50 = arith.select %35, %44, %49 : vector<8x8xi1>, vector<8x8xf32>
    %cst_21 = arith.constant dense<0.000000e+00> : vector<8xf32>
    %51 = vector.multi_reduction <add>, %50, %cst_21 [1] : vector<8x8xf32> to vector<8xf32>
    %52 = vector.shape_cast %51 : vector<8xf32> to vector<8x1xf32>
    %53 = arith.extui %32 : vector<8x8xi1> to vector<8x8xi32>
    %54 = arith.sitofp %53 : vector<8x8xi32> to vector<8x8xf32>
    %cst_22 = arith.constant dense<0.000000e+00> : vector<8xf32>
    %55 = vector.multi_reduction <add>, %54, %cst_22 [1] : vector<8x8xf32> to vector<8xf32>
    %56 = vector.shape_cast %55 : vector<8xf32> to vector<8x1xf32>
    %57 = arith.extui %35 : vector<8x8xi1> to vector<8x8xi32>
    %58 = arith.sitofp %57 : vector<8x8xi32> to vector<8x8xf32>
    %cst_23 = arith.constant dense<0.000000e+00> : vector<8xf32>
    %59 = vector.multi_reduction <add>, %58, %cst_23 [1] : vector<8x8xf32> to vector<8xf32>
    %60 = vector.shape_cast %59 : vector<8xf32> to vector<8x1xf32>
    %cst_24 = arith.constant 0.000000e+00 : f32
    %61 = vector.broadcast %cst_24 : f32 to vector<8x1xf32>
    %62 = arith.cmpf ogt, %56, %61 : vector<8x1xf32>
    %cst_25 = arith.constant 1.000000e+00 : f32
    %63 = vector.broadcast %cst_25 : f32 to vector<8x1xf32>
    %64 = arith.addf %63, %48 : vector<8x1xf32>
    %65 = math.log %64 : vector<8x1xf32>
    %cst_26 = arith.constant 5.000000e-01 : f32
    %66 = vector.broadcast %cst_26 : f32 to vector<8x1xf32>
    %67 = arith.mulf %66, %65 : vector<8x1xf32>
    %cst_27 = arith.constant 0.000000e+00 : f32
    %68 = vector.broadcast %cst_27 : f32 to vector<8x1xf32>
    %69 = arith.select %62, %67, %68 : vector<8x1xi1>, vector<8x1xf32>
    %cst_28 = arith.constant 0.000000e+00 : f32
    %70 = vector.broadcast %cst_28 : f32 to vector<8x1xf32>
    %71 = arith.cmpf ogt, %60, %70 : vector<8x1xf32>
    %cst_29 = arith.constant 1.000000e+00 : f32
    %72 = vector.broadcast %cst_29 : f32 to vector<8x1xf32>
    %73 = arith.addf %72, %52 : vector<8x1xf32>
    %74 = math.log %73 : vector<8x1xf32>
    %cst_30 = arith.constant 2.000000e-02 : f32
    %75 = vector.broadcast %cst_30 : f32 to vector<8x1xf32>
    %76 = arith.mulf %75, %74 : vector<8x1xf32>
    %cst_31 = arith.constant 0.000000e+00 : f32
    %77 = vector.broadcast %cst_31 : f32 to vector<8x1xf32>
    %78 = arith.select %71, %76, %77 : vector<8x1xi1>, vector<8x1xf32>
    %79 = arith.addf %69, %78 : vector<8x1xf32>
    %cst_32 = arith.constant dense<0.000000e+00> : vector<1xf32>
    %80 = vector.multi_reduction <add>, %79, %cst_32 [0] : vector<8x1xf32> to vector<1xf32>
    %81 = vector.shape_cast %80 : vector<1xf32> to vector<1x1xf32>
    %cst_33 = arith.constant 0.000000e+00 : f32
    %82 = vector.broadcast %cst_33 : f32 to vector<8x1xf32>
    %83 = arith.cmpf ogt, %79, %82 : vector<8x1xf32>
    %84 = arith.extui %83 : vector<8x1xi1> to vector<8x1xi32>
    %85 = arith.sitofp %84 : vector<8x1xi32> to vector<8x1xf32>
    %cst_34 = arith.constant dense<0.000000e+00> : vector<1xf32>
    %86 = vector.multi_reduction <add>, %85, %cst_34 [0] : vector<8x1xf32> to vector<1xf32>
    %87 = vector.shape_cast %86 : vector<1xf32> to vector<1x1xf32>
    %cst_35 = arith.constant dense<0.000000e+00> : vector<1xf32>
    %88 = vector.multi_reduction <add>, %56, %cst_35 [0] : vector<8x1xf32> to vector<1xf32>
    %89 = vector.shape_cast %88 : vector<1xf32> to vector<1x1xf32>
    %cst_36 = arith.constant dense<0.000000e+00> : vector<1xf32>
    %90 = vector.multi_reduction <add>, %60, %cst_36 [0] : vector<8x1xf32> to vector<1xf32>
    %91 = vector.shape_cast %90 : vector<1xf32> to vector<1x1xf32>
    %92 = tpu.iota {dimensions = array<i32: 1>} : vector<1x128xi32>
    %c0_i32 = arith.constant 0 : i32
    %93 = vector.broadcast %c0_i32 : i32 to vector<1x128xi32>
    %94 = arith.cmpi eq, %92, %93 : vector<1x128xi32>
    %cst_37 = arith.constant 0.000000e+00 : f32
    %95 = vector.shape_cast %81 : vector<1x1xf32> to vector<1x1xf32>
    %96 = vector.broadcast %95 : vector<1x1xf32> to vector<1x128xf32>
    %97 = vector.broadcast %cst_37 : f32 to vector<1x128xf32>
    %98 = arith.select %94, %96, %97 : vector<1x128xi1>, vector<1x128xf32>
    %c1_i32 = arith.constant 1 : i32
    %99 = vector.broadcast %c1_i32 : i32 to vector<1x128xi32>
    %100 = arith.cmpi eq, %92, %99 : vector<1x128xi32>
    %cst_38 = arith.constant 0.000000e+00 : f32
    %101 = vector.shape_cast %87 : vector<1x1xf32> to vector<1x1xf32>
    %102 = vector.broadcast %101 : vector<1x1xf32> to vector<1x128xf32>
    %103 = vector.broadcast %cst_38 : f32 to vector<1x128xf32>
    %104 = arith.select %100, %102, %103 : vector<1x128xi1>, vector<1x128xf32>
    %105 = arith.addf %98, %104 : vector<1x128xf32>
    %c2_i32 = arith.constant 2 : i32
    %106 = vector.broadcast %c2_i32 : i32 to vector<1x128xi32>
    %107 = arith.cmpi eq, %92, %106 : vector<1x128xi32>
    %cst_39 = arith.constant 0.000000e+00 : f32
    %108 = vector.shape_cast %89 : vector<1x1xf32> to vector<1x1xf32>
    %109 = vector.broadcast %108 : vector<1x1xf32> to vector<1x128xf32>
    %110 = vector.broadcast %cst_39 : f32 to vector<1x128xf32>
    %111 = arith.select %107, %109, %110 : vector<1x128xi1>, vector<1x128xf32>
    %112 = arith.addf %105, %111 : vector<1x128xf32>
    %c3_i32 = arith.constant 3 : i32
    %113 = vector.broadcast %c3_i32 : i32 to vector<1x128xi32>
    %114 = arith.cmpi eq, %92, %113 : vector<1x128xi32>
    %cst_40 = arith.constant 0.000000e+00 : f32
    %115 = vector.shape_cast %91 : vector<1x1xf32> to vector<1x1xf32>
    %116 = vector.broadcast %115 : vector<1x1xf32> to vector<1x128xf32>
    %117 = vector.broadcast %cst_40 : f32 to vector<1x128xf32>
    %118 = arith.select %114, %116, %117 : vector<1x128xi1>, vector<1x128xf32>
    %119 = arith.addf %112, %118 : vector<1x128xf32>
    %120 = vector.shape_cast %119 : vector<1x128xf32> to vector<1x128xf32>
    %121 = vector.broadcast %120 : vector<1x128xf32> to vector<8x128xf32>
    %c0_41 = arith.constant 0 : index
    %c0_42 = arith.constant 0 : index
    %122 = vector.load %arg5[%c0_41, %c0_42] : memref<8x128xf32, #tpu.memory_space<vmem>>, vector<8x128xf32>
    tpu.vector_store %arg5[%c0_41, %c0_42], %121 {strides = array<i32>} : memref<8x128xf32, #tpu.memory_space<vmem>>, vector<8x128xf32>,
    return
  }
  func.func @transform_0(%arg0: i32) -> (i32, i32) {
    %c0_i32 = arith.constant 0 : i32
    %c0_i32_0 = arith.constant 0 : i32
    return %arg0, %c0_i32 : i32, i32
  }
  func.func @transform_1(%arg0: i32) -> (i32, i32) {
    %c0_i32 = arith.constant 0 : i32
    %c0_i32_0 = arith.constant 0 : i32
    %c0_i32_1 = arith.constant 0 : i32
    return %c0_i32, %c0_i32_0 : i32, i32
  }
  func.func @transform_2(%arg0: i32) -> (i32, i32) {
    %c0_i32 = arith.constant 0 : i32
    %c0_i32_0 = arith.constant 0 : i32
    return %arg0, %c0_i32 : i32, i32
  }
  func.func @transform_3(%arg0: i32) -> (i32, i32) {
    %c0_i32 = arith.constant 0 : i32
    %c0_i32_0 = arith.constant 0 : i32
    %c0_i32_1 = arith.constant 0 : i32
    return %c0_i32, %c0_i32_0 : i32, i32
  }
  func.func @transform_4(%arg0: i32) -> (i32, i32) {
    %c0_i32 = arith.constant 0 : i32
    %c0_i32_0 = arith.constant 0 : i32
    return %arg0, %c0_i32 : i32, i32
  }
}

</mosaic_0001>

<bundles_post_ra>
// kernel: tpu_custom_call.1
= control target key start
LH: loop header
LB: loop body
LE: loop exit
PB: predicated region body
PF: predicated region fallthrough
CT: control target
= control target key end

     0   :  { %v343_v1 = vmov 0.0   ;;  %vm344_vm0 = vmmov 0   ;;  %v345_v3 = vmov 0   ;;  %s459_s0 = inlined_call_operand.vmem [shape: bf16[8,128], index: 0, kind: input, shape index: {}]   ;;  %s460_s1 = inlined_call_operand.vmem [shape: bf16[128,8], index: 1, kind: input, shape index: {}]   ;;  %s461_s2 = inlined_call_operand.vmem [shape: s32[8,1], index: 2, kind: input, shape index: {}]   ;;  %s462_s3 = inlined_call_operand.vmem [shape: s32[1,8], index: 3, kind: input, shape index: {}]   ;;  %s463_s4 = inlined_call_operand.hbm [shape: f32[8,128], index: 4, kind: output, shape index: {}]  }
   0x1   :  { %v301_v0 = vld [vmem:[%s460_s1] sm:$0xff]   ;;  %275 = vmatprep.subr.bf16.mxu0 %v343_v1  ;;  %v302_v2 = vld [vmem:[%s460_s1 + $0x8] sm:$0xff]   ;;  %291 = vmatprep.mubr.msk.bf16.mxu0 %vm344_vm0, %v343_v1  ;;  %v303_v4 = vld [vmem:[%s460_s1 + $0x10] sm:$0xff]  }
   0x2   :  { %276 = vmatpush3.bf16.msra.mxu0 %v301_v0  ;;  %300 = vset.pattern.permute.xlu0 %v345_v3  ;;  %v125_v5 = vld [vmem:[%s461_s2] sm:$0xff]  ;;  %v304_v6 = vld [vmem:[%s460_s1 + $0x18] sm:$0xff]  }
   0x3   :  { %277 = vmatprep.subr.bf16.mxu0 %v343_v1  ;;  %128 = vperm.xlu0 %300, %v125_v5  }
   0x6   :  { %278 = vmatpush3.bf16.msra.mxu0 %v302_v2 }
   0x7   :  { %279 = vmatprep.subr.bf16.mxu0 %v343_v1 }
   0xa   :  { %280 = vmatpush3.bf16.msra.mxu0 %v303_v4 }
   0xb   :  { %9 = vsyncpa [#allocation3], 0  ;;  %281 = vmatprep.subr.bf16.mxu0 %v343_v1  ;;  %v305_v7 = vld [vmem:[%s460_s1 + $0x20] sm:$0xff]   ;;  %v306_v8 = vld [vmem:[%s460_s1 + $0x28] sm:$0xff]   ;;  %v135_v12 = vlaneseq  ;;  %vm346_vm2 = vmmov 1   ;;  %vm146_vm7 = vcmask 64512  }
   0xc   :  { %v307_v9 = vld [vmem:[%s460_s1 + $0x30] sm:$0xff]   ;;  %v308_v10 = vld [vmem:[%s460_s1 + $0x38] sm:$0xff]   ;;  %v20_v11 = vld [vmem:[%s459_s0] sm:$0xf]  ;;  %s347_s0 = smov [#allocation2]  }
   0xd   :  { %v412_v13 = vand.u32 127, %v135_v12  ;;  %v138_v14 = vshrl.u32 %v135_v12, 7  ;;  %v260_v15 = vld [vmem:[%s462_s3] ss:$0 sm:$0xff]  ;;  %s244_s1 = sshll.u32 %s347_s0, 4  ;;  %s245_s1 = int_to_ptr.vmem [resolvable:$true] %s244_s1 }
   0xe   :  { %282 = vmatpush3.bf16.msra.mxu0 %v304_v6  ;;  %s319_s3 = scalar_lea.vmem %s245_s1, 128  ;;  %p324_p1 = scmp.lt.s32.totalorder %s245_s1, %s245_s1 }
   0xf   :  { %283 = vmatprep.subr.bf16.mxu0 %v343_v1  ;;  %vm141_vm1 = vcmp.eq.s32.totalorder %v412_v13, %v138_v14  ;;  %vm226_vm15 = vcmp.eq.s32.totalorder %v412_v13, 0  ;;  %vm228_vm0 = vcmp.eq.s32.totalorder %v412_v13, 1  ;;  %p320_p0 = scmp.ne.s32.totalorder %s245_s1, %s319_s3  ;;  %p325_p2 = scmp.lt.s32.totalorder %s319_s3, %s319_s3 }
  0x10   :  { %vm142_vm3 = vmxor %vm141_vm1, %vm346_vm2  ;;  %vm231_vm1 = vcmp.eq.s32.totalorder %v412_v13, 2 }
  0x11   :  { %p326_p3 = por %p325_p2, %p324_p1 }
  0x12   :  { %284 = vmatpush3.bf16.msra.mxu0 %v305_v7 }
  0x13   :  { %285 = vmatprep.subr.bf16.mxu0 %v343_v1  ;;  %p327_p4 = pnand %p326_p3, %p320_p0 }
  0x16   :  { %286 = vmatpush3.bf16.msra.mxu0 %v306_v8 }
  0x17   :  { %287 = vmatprep.subr.bf16.mxu0 %v343_v1 }
  0x1a   :  { %288 = vmatpush3.bf16.msra.mxu0 %v307_v9 }
  0x1b   :  { %289 = vmatprep.subr.bf16.mxu0 %v343_v1 }
  0x1e   :  { %290 = vmatpush3.bf16.msra.mxu0 %v308_v10 }
  0x21   :  { %292 = vmatmul.mubr.bf16.vlgmr.msra.gmra.mrb[0].mxu0 %v20_v11 }
  0x82   :  { %v129_v16 = vpop.permute.xlu0 %128 }
  0x83   :  { %vm134_vm4 = vcmp.eq.s32.totalorder %v129_v16, %v260_v15 }
  0x84   :  { %vm418_vm5 = vmand %vm134_vm4, %vm142_vm3 }
  0x85   :  { %vm422_vm6 = vmxor %vm134_vm4, %vm346_vm2  ;;  %vm234_vm2 = vcmp.eq.s32.totalorder %v412_v13, 3 }
  0xf4   :  { %v119_v19 = vpop.f32.mrb[0].mxu0 }
  0xf5   :  { %v293_v20 = vpop.f32.mrb[1].mxu0  ;;  %v150_v21 = vsel %vm418_vm5, %v119_v19, inf  ;;  %v145_v22 = vsel %vm422_vm6, %v119_v19, -inf  ;;  %v262_v27 = vadd.f32 -0.5, %v119_v19 }
  0xf6   :  { %v122_v23 = vpop.f32.mrb[2].mxu0  ;;  %v151_v24 = vsel %vm146_vm7, %v150_v21, inf  ;;  %v147_v25 = vsel %vm146_vm7, %v145_v22, -inf }
  0xf7   :  { %152 = vmin.xlane.f32.xlu1 %v151_v24  ;;  %148 = vmax.xlane.f32.xlu0 %v147_v25  ;;  %v294_v26 = vpop.f32.mrb[3].mxu0  ;;  %v161_v28 = vmul.f32 2.0, %v262_v27  ;;  %v165_v30 = vmul.f32 50.0, %v262_v27 }
  0xf9   :  { %v162_v29 = vmul.f32 1.442695, %v161_v28  ;;  %v166_v32 = vmul.f32 1.442695, %v165_v30 }
  0xfb   :  { %309 = vpow2.f32 %v162_v29 }
 0x105   :  { %v310_v31 = vpop.eup %309 }
 0x106   :  { %311 = vrcp.f32 %v310_v31 }
 0x107   :  { %313 = vpow2.f32 %v166_v32 }
 0x110   :  { %v312_v37 = vpop.eup %311 }
 0x111   :  { %v314_v39 = vpop.eup %313 }
 0x184   :  { %v153_v33 = vpop.xlane.xlu1 %152  ;;  %v149_v34 = vpop.xlane.xlu0 %148 }
 0x185   :  { %v261_v35 = vadd.f32 -0.1, %v153_v33  ;;  %v154_v36 = vadd.f32 0.1, %v149_v34 }
 0x187   :  { %vm158_vm8 = vcmp.gt.f32.partialorder %v119_v19, %v261_v35  ;;  %vm156_vm9 = vcmp.lt.f32.partialorder %v119_v19, %v154_v36 }
 0x188   :  { %vm157_vm10 = vmand %vm418_vm5, %vm156_vm9 }
 0x189   :  { %v168_v38 = vsel %vm157_vm10, %v312_v37, 0.0  ;;  %vm159_vm11 = vmand %vm422_vm6, %vm158_vm8  ;;  %v263_v43 = vsel %vm157_vm10, 1.0, %v343_v1 }
 0x18a   :  { %v169_v40 = vsel %vm146_vm7, %v168_v38, 0.0  ;;  %v172_v41 = vsel %vm159_vm11, %v314_v39, 0.0  ;;  %v178_v44 = vsel %vm146_vm7, %v263_v43, 0.0  ;;  %v264_v45 = vsel %vm159_vm11, 1.0, %v343_v1 }
 0x18b   :  { %170 = vadd.xlane.f32.xlu1 %v169_v40  ;;  %v173_v42 = vsel %vm146_vm7, %v172_v41, 0.0  ;;  %v183_v46 = vsel %vm146_vm7, %v264_v45, 0.0 }
 0x18f   :  { %174 = vadd.xlane.f32.xlu1 %v173_v42 }
 0x193   :  { %179 = vadd.xlane.f32.xlu1 %v178_v44 }
 0x197   :  { %184 = vadd.xlane.f32.xlu1 %v183_v46 }
 0x218   :  { %v171_v47 = vpop.xlane.xlu1 %170 }
 0x219   :  { %v187_v48 = vadd.f32 1.0, %v171_v47 }
 0x21b   :  { %315 = vlog2.f32 %v187_v48 }
 0x21c   :  { %v175_v49 = vpop.xlane.xlu1 %174 }
 0x21d   :  { %v193_v50 = vadd.f32 1.0, %v175_v49 }
 0x21f   :  { %317 = vlog2.f32 %v193_v50 }
 0x220   :  { %v180_v51 = vpop.xlane.xlu1 %179 }
 0x221   :  { %v214_v56 = vrot.slane %v180_v51, 4  ;;  %vm186_vm12 = vcmp.gt.f32.partialorder %v180_v51, 0.0 }
 0x223   :  { %v215_v61 = vadd.f32 %v214_v56, %v180_v51 }
 0x224   :  { %v185_v54 = vpop.xlane.xlu1 %184 }
 0x225   :  { %v316_v52 = vpop.eup %315  ;;  %v220_v59 = vrot.slane %v185_v54, 4  ;;  %vm192_vm13 = vcmp.gt.f32.partialorder %v185_v54, 0.0  ;;  %v216_v3 = vrot.slane %v215_v61, 2 }
 0x226   :  { %v189_v53 = vmul.f32 0.6931472, %v316_v52 }
 0x227   :  { %v221_v2 = vadd.f32 %v220_v59, %v185_v54  ;;  %v217_v9 = vadd.f32 %v216_v3, %v215_v61 }
 0x228   :  { %v190_v57 = vmul.f32 0.5, %v189_v53 }
 0x229   :  { %v318_v55 = vpop.eup %317  ;;  %v222_v8 = vrot.slane %v221_v2, 2  ;;  %v218_v16 = vrot.slane %v217_v9, 1 }
 0x22a   :  { %v195_v58 = vmul.f32 0.6931472, %v318_v55  ;;  %v191_v62 = vsel %vm186_vm12, %v190_v57, 0.0 }
 0x22b   :  { %v223_v15 = vadd.f32 %v222_v8, %v221_v2  ;;  %v219_v22 = vadd.f32 %v218_v16, %v217_v9 }
 0x22c   :  { %v196_v60 = vmul.f32 0.02, %v195_v58 }
 0x22d   :  { %v224_v19 = vrot.slane %v223_v15, 1  ;;  %v232_v27 = vsel %vm231_vm1, %v219_v22, 0.0 }
 0x22e   :  { %v197_v63 = vsel %vm192_vm13, %v196_v60, 0.0 }
 0x22f   :  { %v198_v0 = vadd.f32 %v197_v63, %v191_v62  ;;  %v225_v23 = vadd.f32 %v224_v19, %v223_v15 }
 0x231   :  { %v199_v4 = vrot.slane %v198_v0, 4  ;;  %vm205_vm14 = vcmp.gt.f32.partialorder %v198_v0, 0.0  ;;  %v235_v29 = vsel %vm234_vm2, %v225_v23, 0.0 }
 0x232   :  { %v265_v5 = vsel %vm205_vm14, 1.0, %v343_v1 }
 0x233   :  { %v200_v6 = vadd.f32 %v199_v4, %v198_v0  ;;  %v208_v7 = vrot.slane %v265_v5, 4 }
 0x235   :  { %v201_v10 = vrot.slane %v200_v6, 2  ;;  %v209_v11 = vadd.f32 %v265_v5, %v208_v7 }
 0x237   :  { %v202_v12 = vadd.f32 %v201_v10, %v200_v6  ;;  %v210_v14 = vrot.slane %v209_v11, 2 }
 0x239   :  { %v203_v17 = vrot.slane %v202_v12, 1  ;;  %v211_v18 = vadd.f32 %v210_v14, %v209_v11 }
 0x23b   :  { %v204_v20 = vadd.f32 %v203_v17, %v202_v12  ;;  %v212_v21 = vrot.slane %v211_v18, 1 }
 0x23d   :  { %v213_v1 = vadd.f32 %v212_v21, %v211_v18  ;;  %v227_v24 = vsel %vm226_vm15, %v204_v20, 0.0 }
 0x23f   :  { %v229_v25 = vsel %vm228_vm0, %v213_v1, 0.0 }
 0x240   :  { %v230_v26 = vadd.f32 %v229_v25, %v227_v24 }
 0x242   :  { %v233_v28 = vadd.f32 %v232_v27, %v230_v26 }
 0x244   :  { %v236_v30 = vadd.f32 %v235_v29, %v233_v28 }
 0x246   :  { %237 = vst [vmem:[#allocation2] sm:$0xff] %v236_v30 }
 0x247   :  { %330 = shalt.err (!%p327_p4)
}
 0x248   :  { %s331_s12 = scalar_lea.hbm %s463_s4, 128 }
 0x249   :  { %p332_p5 = scmp.ne.s32.totalorder %s463_s4, %s331_s12  ;;  %p335_p6 = scmp.lt.u32.totalorder %s331_s12, %s463_s4 }
 0x24b   :  { %p337_p7 = pnand %p335_p6, %p332_p5 }
 0x24d   :  { %340 = shalt.err (!%p337_p7)
}
 0x24e   :  { %247 = dma.vmem_to_hbm [thread:$0]  %s245_s1, 128, %s463_s4, [#allocation3]  }
 0x24f   :  { %341 = dma.done.wait [#allocation3], 128  }
 0x250   :  { %342 = vsyncadd [#allocation3], 4294967168 }
 0x251   :  { %251 = vsyncpa [#allocation3], 1 }

</bundles_post_ra>
